<compile_context>
chip_gen: v6e
topology: v6e:2x2x1
jax: 0.10.0
libtpu: 0.0.40
codegen_flags: <defaults>
</compile_context>

<pallas_src>
import functools

import jax
import jax.numpy as jnp
from jax.experimental import pallas as pl
from jax.experimental.pallas import tpu as pltpu

EPS = 1e-12

# Deterministic class weights from the module's __init__ (35 entries).
WEIGHTS = jnp.array(
    [0.5016, 0.3275, 0.1023, 0.0597, 0.1986, 0.2011, 0.8643, 0.8559, 0.1342,
     0.1297, 0.1014, 0.0685, 0.314, 0.2932, 0.04, 0.2346, 0.5473, 0.2974,
     0.0849, 0.7523, 0.2717, 0.0282, 0.0749, 0.0191, 0.3633, 0.0359, 0.1425,
     0.0454, 0.2201, 0.0178, 0.0285, 0.5125, 0.0838, 0.4605, 0.0124],
    dtype=jnp.float32,
)


def _my_loss_kernel(score_ref, target_ref, posw_ref, psum_ref, *,
                    rows_total, block_rows, tiles_per_core, needs_mask):
    """Accumulates per-core partial loss sums into psum_ref (8, C) row 0."""
    # New output block starts when the inner (batch-tile) axis restarts.
    @pl.when(pl.program_id(1) == 0)
    def _init():
        psum_ref[...] = jnp.zeros_like(psum_ref)

    x = score_ref[...].astype(jnp.float32)                    # (TB, C)
    is_pos = target_ref[...].astype(jnp.float32) > 0.5        # binary targets
    pw = posw_ref[...].astype(jnp.float32)                    # (1, C) = exp(1-w)

    s = jax.nn.sigmoid(x)                                     # EUP: exp + recip
    # For T==1: exp(1-w) * log(s + EPS); for T==0: 1 * log(1 - s + EPS).
    log_arg = jnp.where(is_pos, s, 1.0 - s) + EPS             # VPU select
    coef = jnp.where(is_pos, pw, jnp.float32(1.0))            # VPU select/bcast
    loss = coef * jnp.log(log_arg)                            # single EUP log

    if needs_mask:
        c = pl.program_id(0)
        i = pl.program_id(1)
        row0 = (c * tiles_per_core + i) * block_rows
        rows = row0 + jax.lax.broadcasted_iota(jnp.int32, loss.shape, 0)
        loss = jnp.where(rows < rows_total, loss, 0.0)        # zero padded rows

    # Reduce over the row (sublane) axis only; the tiny (rows, C) partial-sum
    # tensor is finished off in the wrapper.
    psum_ref[0:1, :] += jnp.sum(loss, axis=0, keepdims=True)


def my_loss(score, target, weights=WEIGHTS, block_rows=2048):
    """score, target: (B, 35). Returns scalar float32 loss (binary targets)."""
    assert score.shape == target.shape and score.ndim == 2
    b, c = score.shape

    # Per-class positive weight exp(1 - w): exact replacement of
    # exp(T + (1-2T)*w) for binary T (only the T==1 branch uses it).
    pos_w = jnp.exp(1.0 - weights.astype(jnp.float32)).reshape(1, c)

    # Row-tile size: full batch if it fits, else a multiple-of-8 tile.
    if b <= block_rows:
        tb = b
    else:
        assert block_rows % 8 == 0
        tb = block_rows
    num_tiles = pl.cdiv(b, tb)
    # Leading "parallel" axis: lets v7x's two TensorCores split the batch;
    # on v5e/v6e (single TC) it is just a harmless serial split.
    num_splits = 2 if num_tiles >= 2 else 1
    tpc = pl.cdiv(num_tiles, num_splits)                       # tiles per core
    needs_mask = (num_splits * tpc * tb) != b
    clamp_blocks = (num_splits * tpc) != num_tiles

    def data_map(ci, ti):
        blk = ci * tpc + ti
        if clamp_blocks:
            # Overflow tiles re-read the last real tile; their rows are masked.
            blk = jnp.minimum(blk, num_tiles - 1)
        return (blk, 0)

    kernel = functools.partial(
        _my_loss_kernel, rows_total=b, block_rows=tb,
        tiles_per_core=tpc, needs_mask=needs_mask)

    # Per-core partial sums; row padding to 8 keeps the output block (8, C)
    # aligned to the (8, 128) tiling rule. Unused rows stay zero.
    partial_sums = pl.pallas_call(
        kernel,
        out_shape=jax.ShapeDtypeStruct((num_splits * 8, c), jnp.float32),
        grid=(num_splits, tpc),
        in_specs=[
            pl.BlockSpec((tb, c), data_map),                   # Score tiles
            pl.BlockSpec((tb, c), data_map),                   # Target tiles
            pl.BlockSpec((1, c), lambda ci, ti: (0, 0)),       # exp(1-w), resident
        ],
        out_specs=pl.BlockSpec((8, c), lambda ci, ti: (ci, 0)),
        compiler_params=pltpu.CompilerParams(
            dimension_semantics=("parallel", "arbitrary")),
    )(score, target, pos_w)

    return -(jnp.sum(partial_sums) / (b * c))


def _reference(score, target, weights=WEIGHTS):
    """Direct transcription of the PyTorch forward."""
    s = jax.nn.sigmoid(score.astype(jnp.float32))
    tgt = target.astype(jnp.float32)
    w = weights.reshape(1, -1).astype(jnp.float32)
    cur_w = jnp.exp(tgt + (1.0 - tgt * 2.0) * w)
    loss = cur_w * (tgt * jnp.log(s + EPS)) + (1.0 - tgt) * jnp.log(1.0 - s + EPS)
    return -jnp.mean(loss)


if __name__ == "__main__":
    key = jax.random.PRNGKey(0)
    k1, k2, k3, k4 = jax.random.split(key, 4)
    C = 35  # number of classes implied by the weight vector

    # Small case: single block, no masking.
    B = 8
    score = jax.random.normal(k1, (B, C), dtype=jnp.float32)
    target = (jax.random.uniform(k2, (B, C)) > 0.5).astype(jnp.float32)
    out = jax.block_until_ready(my_loss(score, target))
    ref = _reference(score, target)
    assert jnp.allclose(out, ref, rtol=1e-5, atol=1e-6), (out, ref)

    # Larger case exercising the tiled / split / masked path (small tiles on
    # purpose so the multi-tile + overflow-tile clamp code runs).
    B2 = 70
    score2 = jax.random.normal(k3, (B2, C), dtype=jnp.float32)
    target2 = (jax.random.uniform(k4, (B2, C)) > 0.5).astype(jnp.float32)
    out2 = jax.block_until_ready(my_loss(score2, target2, block_rows=32))
    ref2 = _reference(score2, target2)
    assert jnp.allclose(out2, ref2, rtol=1e-5, atol=1e-6), (out2, ref2)

    print("KERNEL_OK")
</pallas_src>

<mosaic_0001>
module attributes {stable_mosaic.version = 11 : i64} {
  func.func @_my_loss_kernel(%arg0: i32, %arg1: i32, %arg2: memref<8x35xf32, #tpu.memory_space<vmem>>, %arg3: memref<8x35xf32, #tpu.memory_space<vmem>>, %arg4: memref<1x35xf32, #tpu.memory_space<vmem>>, %arg5: memref<8x35xf32, #tpu.memory_space<vmem>>) attributes {dimension_semantics = [#tpu.dimension_semantics<parallel>, #tpu.dimension_semantics<arbitrary>], iteration_bounds = array<i64: 1, 1>, scalar_prefetch = 0 : i64, scratch_operands = 0 : i64, tpu.core_type = #tpu.core_type<tc>, window_params = [{transform_indices = @transform_0, window_bounds = array<i64: 8, 35>}, {transform_indices = @transform_1, window_bounds = array<i64: 8, 35>}, {pipeline_mode = #tpu.pipeline_mode<synchronous>, transform_indices = @transform_2, window_bounds = array<i64: 1, 35>}, {transform_indices = @transform_3, window_bounds = array<i64: 8, 35>}]} {
    %c0_i32 = arith.constant 0 : i32
    %0 = arith.cmpi eq, %arg1, %c0_i32 : i32
    %1 = arith.extui %0 : i1 to i32
    %c0_i32_0 = arith.constant 0 : i32
    %2 = arith.cmpi ne, %1, %c0_i32_0 : i32
    scf.if %2 {
      %cst_15 = arith.constant 0.000000e+00 : f32
      %29 = vector.broadcast %cst_15 : f32 to vector<8x35xf32>
      %c0_16 = arith.constant 0 : index
      %c0_17 = arith.constant 0 : index
      %30 = vector.load %arg5[%c0_16, %c0_17] : memref<8x35xf32, #tpu.memory_space<vmem>>, vector<8x35xf32>
      tpu.vector_store %arg5[%c0_16, %c0_17], %29 {strides = array<i32>} : memref<8x35xf32, #tpu.memory_space<vmem>>, vector<8x35xf32>,
    } else {
    }
    %c0 = arith.constant 0 : index
    %c0_1 = arith.constant 0 : index
    %3 = vector.load %arg2[%c0, %c0_1] : memref<8x35xf32, #tpu.memory_space<vmem>>, vector<8x35xf32>
    %c0_2 = arith.constant 0 : index
    %c0_3 = arith.constant 0 : index
    %4 = vector.load %arg3[%c0_2, %c0_3] : memref<8x35xf32, #tpu.memory_space<vmem>>, vector<8x35xf32>
    %cst = arith.constant 5.000000e-01 : f32
    %5 = vector.broadcast %cst : f32 to vector<8x35xf32>
    %6 = arith.cmpf ogt, %4, %5 : vector<8x35xf32>
    %c0_4 = arith.constant 0 : index
    %c0_5 = arith.constant 0 : index
    %7 = vector.load %arg4[%c0_4, %c0_5] : memref<1x35xf32, #tpu.memory_space<vmem>>, vector<1x35xf32>
    %8 = arith.negf %3 : vector<8x35xf32>
    %9 = math.exp %8 : vector<8x35xf32>
    %cst_6 = arith.constant 1.000000e+00 : f32
    %10 = vector.broadcast %cst_6 : f32 to vector<8x35xf32>
    %11 = arith.addf %10, %9 : vector<8x35xf32>
    %12 = arith.divf %10, %11 : vector<8x35xf32>
    %cst_7 = arith.constant 1.000000e+00 : f32
    %13 = vector.broadcast %cst_7 : f32 to vector<8x35xf32>
    %14 = arith.subf %13, %12 : vector<8x35xf32>
    %15 = arith.select %6, %12, %14 : vector<8x35xi1>, vector<8x35xf32>
    %cst_8 = arith.constant 9.99999996E-13 : f32
    %16 = vector.broadcast %cst_8 : f32 to vector<8x35xf32>
    %17 = arith.addf %15, %16 : vector<8x35xf32>
    %cst_9 = arith.constant 1.000000e+00 : f32
    %18 = vector.shape_cast %7 : vector<1x35xf32> to vector<1x35xf32>
    %19 = vector.broadcast %18 : vector<1x35xf32> to vector<8x35xf32>
    %20 = vector.broadcast %cst_9 : f32 to vector<8x35xf32>
    %21 = arith.select %6, %19, %20 : vector<8x35xi1>, vector<8x35xf32>
    %22 = math.log %17 : vector<8x35xf32>
    %23 = arith.mulf %21, %22 : vector<8x35xf32>
    %c0_10 = arith.constant 0 : index
    %c0_11 = arith.constant 0 : index
    %24 = vector.load %arg5[%c0_10, %c0_11] : memref<8x35xf32, #tpu.memory_space<vmem>>, vector<1x35xf32>
    %cst_12 = arith.constant dense<0.000000e+00> : vector<35xf32>
    %25 = vector.multi_reduction <add>, %23, %cst_12 [0] : vector<8x35xf32> to vector<35xf32>
    %26 = vector.shape_cast %25 : vector<35xf32> to vector<1x35xf32>
    %27 = arith.addf %24, %26 : vector<1x35xf32>
    %c0_13 = arith.constant 0 : index
    %c0_14 = arith.constant 0 : index
    %28 = vector.load %arg5[%c0_13, %c0_14] : memref<8x35xf32, #tpu.memory_space<vmem>>, vector<1x35xf32>
    tpu.vector_store %arg5[%c0_13, %c0_14], %27 {strides = array<i32>} : memref<8x35xf32, #tpu.memory_space<vmem>>, vector<1x35xf32>,
    return
  }
  func.func @transform_0(%arg0: i32, %arg1: i32) -> (i32, i32) {
    %c1_i32 = arith.constant 1 : i32
    %0 = arith.muli %arg0, %c1_i32 : i32
    %1 = arith.addi %0, %arg1 : i32
    %c0_i32 = arith.constant 0 : i32
    %c0_i32_0 = arith.constant 0 : i32
    return %1, %c0_i32 : i32, i32
  }
  func.func @transform_1(%arg0: i32, %arg1: i32) -> (i32, i32) {
    %c1_i32 = arith.constant 1 : i32
    %0 = arith.muli %arg0, %c1_i32 : i32
    %1 = arith.addi %0, %arg1 : i32
    %c0_i32 = arith.constant 0 : i32
    %c0_i32_0 = arith.constant 0 : i32
    return %1, %c0_i32 : i32, i32
  }
  func.func @transform_2(%arg0: i32, %arg1: i32) -> (i32, i32) {
    %c0_i32 = arith.constant 0 : i32
    %c0_i32_0 = arith.constant 0 : i32
    %c0_i32_1 = arith.constant 0 : i32
    return %c0_i32, %c0_i32_0 : i32, i32
  }
  func.func @transform_3(%arg0: i32, %arg1: i32) -> (i32, i32) {
    %c0_i32 = arith.constant 0 : i32
    %c0_i32_0 = arith.constant 0 : i32
    return %arg0, %c0_i32 : i32, i32
  }
}

</mosaic_0001>

<bundles_post_ra>
// kernel: tpu_custom_call.1
= control target key start
LH: loop header
LB: loop body
LE: loop exit
PB: predicated region body
PF: predicated region fallthrough
CT: control target
= control target key end

     0   :  { %8 = vsyncpa [#allocation3], 0  ;;  %s220_s0 = inlined_call_operand.hbm [shape: f32[8,35], index: 0, kind: input, shape index: {}]   ;;  %s221_s1 = inlined_call_operand.hbm [shape: f32[8,35], index: 1, kind: input, shape index: {}]   ;;  %s222_s2 = inlined_call_operand.vmem [shape: f32[1,35], index: 2, kind: input, shape index: {}]   ;;  %s223_s3 = inlined_call_operand.hbm [shape: f32[8,35], index: 3, kind: output, shape index: {}]  }
   0x1   :  { %9 = vsyncpa [#allocation6], 0 }
   0x2   :  { %10 = vsyncpa [#allocation4], 0  ;;  %s182_s12 = smov [#allocation2]   ;;  %s183_s14 = smov [#allocation5]  }
   0x3   :  { %s20_s13 = sshll.u32 %s182_s12, 4  ;;  %s33_s15 = sshll.u32 %s183_s14, 4  ;;  %s21_s13 = int_to_ptr.vmem [resolvable:$true] %s20_s13  ;;  %s34_s15 = int_to_ptr.vmem [resolvable:$true] %s33_s15 }
   0x4   :  { %s124_s16 = scalar_lea.vmem %s21_s13, 128  ;;  %p129_p1 = scmp.lt.s32.totalorder %s21_s13, %s21_s13 }
   0x5   :  { %p125_p0 = scmp.ne.s32.totalorder %s21_s13, %s124_s16  ;;  %p130_p2 = scmp.lt.s32.totalorder %s124_s16, %s124_s16 }
   0x7   :  { %p131_p3 = por %p130_p2, %p129_p1 }
   0x9   :  { %p132_p4 = pnand %p131_p3, %p125_p0 }
   0xb   :  { %135 = shalt.err (!%p132_p4)
}
   0xc   :  { %23 = dma.hbm_to_vmem [thread:$0]  %s220_s0, 128, %s21_s13, [#allocation3]  }
   0xd   :  { %s144_s19 = scalar_lea.vmem %s34_s15, 128  ;;  %p149_p6 = scmp.lt.s32.totalorder %s34_s15, %s34_s15 }
   0xe   :  { %p145_p5 = scmp.ne.s32.totalorder %s34_s15, %s144_s19  ;;  %p150_p7 = scmp.lt.s32.totalorder %s144_s19, %s144_s19 }
  0x10   :  { %p151_p8 = por %p150_p7, %p149_p6 }
  0x12   :  { %p152_p9 = pnand %p151_p8, %p145_p5 }
  0x14   :  { %155 = shalt.err (!%p152_p9)
}
  0x15   :  { %36 = dma.hbm_to_vmem [thread:$0]  %s221_s1, 128, %s34_s15, [#allocation6]  }
  0x16   :  { %176 = dma.done.wait [#allocation3], 128  }
  0x17   :  { %177 = vsyncadd [#allocation3], 4294967168 }
  0x18   :  { %178 = dma.done.wait [#allocation6], 128  }
  0x19   :  { %179 = vsyncadd [#allocation6], 4294967168  ;;  %vm51_vm0 = vcmask 285696   ;;  %v184_v0 = vmov 0.0   ;;  %v53_v1 = vld [vmem:[#allocation2] sm:$0xff]  ;;  %v54_v5 = vld [vmem:[#allocation5] sm:$0xff] }
  0x1a   :  { %52 = vst.msk [vmem:[#allocation7] sm:$0xff] %vm51_vm0, %v184_v0  ;;  %v104_v2 = vmul.f32 -1.442695, %v53_v1  ;;  %vm55_vm1 = vcmp.gt.f32.partialorder %v54_v5, 0.5  ;;  %v105_v10 = vld [vmem:[%s222_s2] ss:$0 sm:$0xff] }
  0x1b   :  { %v72_v12 = vsel %vm55_vm1, %v105_v10, 1.0  ;;  %s185_s22 = smov [#allocation7]   ;;  %vm86_vm2 = vcmask 278528  }
  0x1c   :  { %110 = vpow2.f32 %v104_v2  ;;  %s94_s23 = sshll.u32 %s185_s22, 4  ;;  %s95_s23 = int_to_ptr.vmem [resolvable:$true] %s94_s23 }
  0x1d   :  { %s156_s2 = scalar_lea.vmem %s95_s23, 128  ;;  %p161_p11 = scmp.lt.s32.totalorder %s95_s23, %s95_s23 }
  0x1e   :  { %p157_p10 = scmp.ne.s32.totalorder %s95_s23, %s156_s2  ;;  %p162_p12 = scmp.lt.s32.totalorder %s156_s2, %s156_s2 }
  0x20   :  { %p163_p13 = por %p162_p12, %p161_p11 }
  0x21   :  { %v76_v21 = vld [vmem:[#allocation7] sm:$0x1] }
  0x22   :  { %p164_p0 = pnand %p163_p13, %p157_p10 }
  0x29   :  { %v111_v3 = vpop.eup %110 }
  0x2a   :  { %v60_v4 = vadd.f32 1.0, %v111_v3 }
  0x2c   :  { %112 = vrcp.f32 %v60_v4 }
  0x39   :  { %v113_v6 = vpop.eup %112 }
  0x3a   :  { %v63_v7 = vsub.f32 1.0, %v113_v6 }
  0x3c   :  { %v64_v8 = vsel %vm55_vm1, %v113_v6, %v63_v7 }
  0x3d   :  { %v65_v9 = vadd.f32 1e-12, %v64_v8 }
  0x3f   :  { %114 = vlog2.f32 %v65_v9 }
  0x4c   :  { %v115_v11 = vpop.eup %114 }
  0x4d   :  { %v74_v13 = vmul.f32 0.6931472, %v115_v11 }
  0x4f   :  { %v75_v14 = vmul.f32 %v74_v13, %v72_v12 }
  0x51   :  { %v78_v15 = vsel %vm51_vm0, %v75_v14, 0.0 }
  0x52   :  { %v79_v16 = vrot.slane %v78_v15, 4 }
  0x54   :  { %v80_v17 = vadd.f32 %v79_v16, %v78_v15 }
  0x56   :  { %v81_v18 = vrot.slane %v80_v17, 2 }
  0x58   :  { %v82_v19 = vadd.f32 %v81_v18, %v80_v17 }
  0x5a   :  { %v83_v20 = vrot.slane %v82_v19, 1 }
  0x5c   :  { %v84_v22 = vadd.f32 %v83_v20, %v82_v19 }
  0x5e   :  { %v85_v23 = vadd.f32 %v84_v22, %v76_v21 }
  0x60   :  { %87 = vst.msk [vmem:[#allocation7] sm:$0x1] %vm86_vm2, %v85_v23 }
  0x61   :  { %167 = shalt.err (!%p164_p0)
}
  0x62   :  { %97 = dma.vmem_to_hbm [thread:$0]  %s95_s23, 128, %s223_s3, [#allocation4]  }
  0x63   :  { %180 = dma.done.wait [#allocation4], 128  }
  0x64   :  { %181 = vsyncadd [#allocation4], 4294967168 }
  0x65   :  { %101 = vsyncpa [#allocation3], 1 }
  0x66   :  { %102 = vsyncpa [#allocation6], 1 }
  0x67   :  { %103 = vsyncpa [#allocation4], 1 }

</bundles_post_ra>
